<compile_context>
chip_gen: v7x
topology: tpu7x:2x2x1
jax: 0.10.0
libtpu: 0.0.40
codegen_flags: <defaults>
</compile_context>

<pallas_src>
import functools

import jax
import jax.numpy as jnp
from jax.experimental import pallas as pl
from jax.experimental.pallas import tpu as pltpu


def _matmul_kernel(w_ref, p_ref, o_ref):
    # w_ref : (Cout2p, KKCp)   bf16 im2col weights, resident for the whole grid
    # p_ref : (1, KKCp, tM)    bf16 im2col patch columns (lane axis = spatial)
    # o_ref : (1, Cout2p, tM)  f32 output tile — spatial on lanes (full vst),
    #                          channels on sublanes (no Cout lane padding).
    o_ref[0] = jnp.dot(w_ref[...], p_ref[0],
                       preferred_element_type=jnp.float32)


def _pick_m_tile(HW, n_batch):
    """Spatial (lane-axis) tile: largest divisor of HW that is a multiple of
    128 and <= 512 (MXU-friendly, amortizes per-step overhead); fall back to a
    multiple of 8, then the full extent.  If the whole grid would collapse to a
    single step (idles one v7x TensorCore), halve the tile."""
    def largest(cap, mult):
        cands = [t for t in range(1, min(HW, cap) + 1)
                 if HW % t == 0 and t % mult == 0]
        return max(cands) if cands else None

    tM = largest(512, 128) or largest(512, 8) or HW
    if n_batch * (HW // tM) < 2:                     # v7x: 2 TensorCores/chip
        smaller = largest(tM // 2, 128) or largest(tM // 2, 8)
        if smaller:
            tM = smaller
    return tM


def complex_conv2d(z, wA, wB, *, padding=1):
    """z: complex64 (N, Cin, H, W); wA, wB: float32 (Cout, Cin, KH, KW)."""
    N, Cin, H, W = z.shape
    Cout, _, KH, KW = wA.shape
    Cin2, Cout2 = 2 * Cin, 2 * Cout
    assert KH == KW and 2 * padding == KH - 1, (
        "only 'same' convolution supported (2*padding == kernel_size - 1)")

    HW = H * W
    KKC = KH * KW * Cin2                              # im2col contraction depth
    KKCp = ((KKC + 127) // 128) * 128                 # lane-dense contraction
    Cout2p = ((Cout2 + 7) // 8) * 8                   # sublane-aligned channels

    # ---- Activations: cast to bf16 FIRST (halves the bytes the concat/pad
    # passes move), stack real/imag on channels, pad spatially (stay NCHW). ---
    x = jnp.real(z).astype(jnp.bfloat16)
    y = jnp.imag(z).astype(jnp.bfloat16)
    u = jnp.concatenate([x, y], axis=1)               # (N, 2Cin, H, W)
    u = jnp.pad(u, ((0, 0), (0, 0), (padding, padding), (padding, padding)))

    # ---- Wrapper-side im2col, already transposed: rows = (ki, kj, c), cols =
    # flattened spatial r*W + col.  All relayout work stays out of the kernel.
    # TODO(synk): for very large H*W*Cin, assemble the patch in-kernel from a
    # VMEM-resident image (scratch buffer) to avoid the KH*KW HBM expansion.
    taps = [u[:, :, i:i + H, j:j + W] for i in range(KH) for j in range(KW)]
    patchT = jnp.stack(taps, axis=1)                  # (N, KH*KW, 2Cin, H, W)
    patchT = patchT.reshape(N, KKC, HW)
    patchT = jnp.pad(patchT, ((0, 0), (0, KKCp - KKC), (0, 0)))   # (N, KKCp, HW)

    # ---- Weights: block matrix [[A,-B],[B,A]] flattened to (Cout2p, KKCp)
    # with column order (ki, kj, c) matching the patch row order. -------------
    w_x = jnp.concatenate([wA, -wB], axis=1)          # rows -> X = A x - B y
    w_y = jnp.concatenate([wB, wA], axis=1)           # rows -> Y = B x + A y
    w_big = jnp.concatenate([w_x, w_y], axis=0)       # (2Cout, 2Cin, KH, KW)
    w2 = jnp.transpose(w_big, (0, 2, 3, 1)).reshape(Cout2, KKC)
    w2 = jnp.pad(w2, ((0, Cout2p - Cout2), (0, KKCp - KKC))).astype(jnp.bfloat16)

    tM = _pick_m_tile(HW, N)
    nM = HW // tM

    # VMEM budget from the real (lane-dense) per-step footprint; cap keeps
    # headroom under v7x's 64 MiB physical VMEM (v5e/v6e have 128 MiB).
    step_bytes = (2 * KKCp * tM * 2                   # patch tile, bf16, 2 bufs
                  + 2 * Cout2p * tM * 4               # output tile, f32, 2 bufs
                  + 2 * Cout2p * KKCp * 2)            # weights (conservative)
    vmem_limit = min(max(4 * step_bytes, 16 << 20), 48 << 20)

    out = pl.pallas_call(
        _matmul_kernel,
        out_shape=jax.ShapeDtypeStruct((N, Cout2p, HW), jnp.float32),
        grid_spec=pltpu.PrefetchScalarGridSpec(
            num_scalar_prefetch=0,
            grid=(N, nM),
            in_specs=[
                # Weights: constant index_map -> resident across the grid.
                # TODO(synk): pipeline_mode=pl.Buffered(1) would drop the
                # redundant second weight buffer once Cin/Cout get large.
                pl.BlockSpec((Cout2p, KKCp), lambda n, m: (0, 0)),
                # Patch columns for this (image, spatial tile).
                pl.BlockSpec((1, KKCp, tM), lambda n, m: (n, 0, m)),
            ],
            out_specs=pl.BlockSpec((1, Cout2p, tM), lambda n, m: (n, 0, m)),
        ),
        compiler_params=pltpu.CompilerParams(
            dimension_semantics=("parallel", "parallel"),
            vmem_limit_bytes=vmem_limit,
        ),
    )(w2, patchT)

    # Un-pad channels; result is already NCHW-ordered — no final transpose.
    out = out[:, :Cout2].reshape(N, Cout2, H, W)
    return jax.lax.complex(out[:, :Cout], out[:, Cout:])


def _reference(z, wA, wB, padding=1):
    """Pure-JAX reference (lax conv) for correctness checking."""
    x = jnp.real(z).astype(jnp.float32)
    y = jnp.imag(z).astype(jnp.float32)
    dn = jax.lax.conv_dimension_numbers(x.shape, wA.shape,
                                        ("NCHW", "OIHW", "NCHW"))
    conv = lambda inp, w: jax.lax.conv_general_dilated(
        inp, w, window_strides=(1, 1),
        padding=[(padding, padding), (padding, padding)],
        dimension_numbers=dn)
    X = conv(x, wA) - conv(y, wB)
    Y = conv(y, wA) + conv(x, wB)
    return jax.lax.complex(X, Y)


if __name__ == "__main__":
    N, Cin, Cout, H, W, K = 2, 4, 8, 16, 16, 3

    key = jax.random.PRNGKey(0)
    kx, ky, ka, kb = jax.random.split(key, 4)

    x = jax.random.normal(kx, (N, Cin, H, W), jnp.float32)
    y = jax.random.normal(ky, (N, Cin, H, W), jnp.float32)
    z = jax.lax.complex(x, y)  # (2, 4, 16, 16) complex64

    # Deterministic "kaiming-uniform-ish" init matching nn.Conv2d weight shapes.
    fan_in = Cin * K * K
    bound = 1.0 / jnp.sqrt(fan_in)
    wA = jax.random.uniform(ka, (Cout, Cin, K, K), jnp.float32, -bound, bound)
    wB = jax.random.uniform(kb, (Cout, Cin, K, K), jnp.float32, -bound, bound)

    out = complex_conv2d(z, wA, wB)
    out = jax.block_until_ready(out)

    ref = _reference(z, wA, wB)
    assert out.shape == (N, Cout, H, W) and out.dtype == jnp.complex64
    # bf16 activations/weights with f32 accumulation: loosened tolerance.
    assert jnp.allclose(out, ref, atol=5e-2, rtol=5e-2), "mismatch vs reference"

    print("KERNEL_OK")
</pallas_src>

<mosaic_0001>
module attributes {stable_mosaic.version = 11 : i64} {
  func.func @_matmul_kernel(%arg0: i32, %arg1: i32, %arg2: memref<16x128xbf16, #tpu.memory_space<vmem>>, %arg3: memref<1x128x256xbf16, #tpu.memory_space<vmem>>, %arg4: memref<1x16x256xf32, #tpu.memory_space<vmem>>) attributes {dimension_semantics = [#tpu.dimension_semantics<parallel>, #tpu.dimension_semantics<parallel>], iteration_bounds = array<i64: 2, 1>, scalar_prefetch = 0 : i64, scratch_operands = 0 : i64, tpu.core_type = #tpu.core_type<tc>, window_params = [{pipeline_mode = #tpu.pipeline_mode<synchronous>, transform_indices = @transform_0, window_bounds = array<i64: 16, 128>}, {transform_indices = @transform_1, window_bounds = array<i64: 1, 128, 256>}, {transform_indices = @transform_2, window_bounds = array<i64: 1, 16, 256>}]} {
    %c0 = arith.constant 0 : index
    %c0_0 = arith.constant 0 : index
    %0 = vector.load %arg2[%c0, %c0_0] : memref<16x128xbf16, #tpu.memory_space<vmem>>, vector<16x128xbf16>
    %c0_1 = arith.constant 0 : index
    %c0_2 = arith.constant 0 : index
    %c0_3 = arith.constant 0 : index
    %1 = vector.load %arg3[%c0_1, %c0_2, %c0_3] : memref<1x128x256xbf16, #tpu.memory_space<vmem>>, vector<1x128x256xbf16>
    %2 = vector.shape_cast %1 : vector<1x128x256xbf16> to vector<128x256xbf16>
    %cst = arith.constant dense<0.000000e+00> : vector<16x256xf32>
    %3 = tpu.matmul %0, %2, %cst {dimension_numbers = #tpu.dot_dimension_numbers<[1], [0], [0], [1], [0, 0, 1, 1], [], []>} : vector<16x128xbf16>, vector<128x256xbf16>, vector<16x256xf32> -> vector<16x256xf32>
    %c0_4 = arith.constant 0 : index
    %c0_5 = arith.constant 0 : index
    %c0_6 = arith.constant 0 : index
    %4 = vector.load %arg4[%c0_4, %c0_5, %c0_6] : memref<1x16x256xf32, #tpu.memory_space<vmem>>, vector<1x16x256xf32>
    %5 = vector.shape_cast %4 : vector<1x16x256xf32> to vector<16x256xf32>
    %6 = vector.shape_cast %3 : vector<16x256xf32> to vector<1x16x256xf32>
    tpu.vector_store %arg4[%c0_4, %c0_5, %c0_6], %6 {strides = array<i32>} : memref<1x16x256xf32, #tpu.memory_space<vmem>>, vector<1x16x256xf32>,
    return
  }
  func.func @transform_0(%arg0: i32, %arg1: i32) -> (i32, i32) {
    %c0_i32 = arith.constant 0 : i32
    %c0_i32_0 = arith.constant 0 : i32
    %c0_i32_1 = arith.constant 0 : i32
    return %c0_i32, %c0_i32_0 : i32, i32
  }
  func.func @transform_1(%arg0: i32, %arg1: i32) -> (i32, i32, i32) {
    %c0_i32 = arith.constant 0 : i32
    %c0_i32_0 = arith.constant 0 : i32
    return %arg0, %c0_i32, %arg1 : i32, i32, i32
  }
  func.func @transform_2(%arg0: i32, %arg1: i32) -> (i32, i32, i32) {
    %c0_i32 = arith.constant 0 : i32
    %c0_i32_0 = arith.constant 0 : i32
    return %arg0, %c0_i32, %arg1 : i32, i32, i32
  }
}

</mosaic_0001>

<bundles_post_ra>
// kernel: tpu_custom_call.1
= control target key start
LH: loop header
LB: loop body
LE: loop exit
PB: predicated region body
PF: predicated region fallthrough
CT: control target
= control target key end

     0   :  { %7 = vsyncpa [#allocation3], 0  ;;  %s1014_s0 = inlined_call_operand.hbm [shape: bf16[16,128], index: 0, kind: input, shape index: {}]   ;;  %s1015_s1 = inlined_call_operand.hbm [shape: bf16[2,128,256], index: 1, kind: input, shape index: {}]   ;;  %s1016_s2 = inlined_call_operand.hbm [shape: f32[2,16,256], index: 2, kind: output, shape index: {}]  }
   0x1   :  { %8 = vsyncpa [#allocation6], 0 }
   0x2   :  { %10 = vsyncpa [#allocation6 + $0x1], 0 }
   0x3   :  { %11 = vsyncpa [#allocation4], 0 }
   0x4   :  { %13 = vsyncpa [#allocation4 + $0x1], 0  ;;  %s776_s9 = smov 0   ;;  %s778_s10 = smov 0  }
   0x5   :  { %s780_s11 = smov 0   ;;  %s782_s12 = smov 0  }
   0x6   :  { %s784_s13 = smov 0   ;;  %s786_s14 = smov 0  }
   0x7 LB: > { %s464_s15 = sadd.s32 4294967295, %s749_s14   ;;  %s465_s16 = sadd.s32 4294967294, %s749_s14   ;;  %s749_s14 = sphi %s786_s14, %s19_s14   ;;  %s745_s13 = sphi %s784_s13, %s1040_s13   ;;  %s741_s12 = sphi %s782_s12, %s1039_s12   ;;  %s737_s11 = sphi %s780_s11, %s1038_s11   ;;  %s733_s10 = sphi %s778_s10, %s1037_s10   ;;  %s729_s9 = sphi %s776_s9, %s1036_s9  }
   0x8   : > { %p74_p0 = scmp.ne.s32.totalorder %s733_s10, %s729_s9  ;;  %p810_p1 = scmp.eq.s32.totalorder %s464_s15, 0 }
   0x9   : > { %p814_p2 = scmp.eq.s32.totalorder %s464_s15, 1  ;;  %p106_p3 = scmp.eq.s32.totalorder %s465_s16, 1 }
   0xa   : > { %s1021_s17 = scalar_select %p810_p1, 1, 0 }
   0xb   : > { %s1022_s18 = scalar_select %p814_p2, 1, 0 }
   0xc   : > { %p820_p4 = por %p810_p1, %p74_p0  ;;  %p466_p5 = scmp.ge.s32.totalorder %s749_s14, 1 }
   0xd   : > { %p825_p6 = por %p106_p3, %p74_p0  ;;  %p113_p7 = scmp.lt.s32.totalorder %s749_s14, 3 }
   0xe   : > { %s1023_s19 = scalar_select %p820_p4, 1, 0 }
   0xf   : > { %s1024_s20 = scalar_select %p825_p6, 1, 0 }
  0x10   : > { %p830_p8 = pnand %p466_p5, %p113_p7  ;;  %s751_s22 = smov [#allocation2]  }
  0x11   : > { %s125_s23 = sshll.u32 %s751_s22, 4  ;;  %s31_s25 = sadd.s32 1, %s745_s13  ;;  %s126_s23 = int_to_ptr.vmem [resolvable:$true] %s125_s23 }
  0x12   : > { %s1025_s21 = scalar_select %p830_p8, 1, 0 }
  0x13   : > { %p508_p9 = pneg %p830_p8  ;;  %s605_s28 = scalar_lea.hbm %s1014_s0, 128 }
  0x14   : > { %p606_p12 = scmp.ne.s32.totalorder %s1014_s0, %s605_s28  ;;  %p612_p5 = scmp.lt.u32.totalorder %s605_s28, %s1014_s0 }
  0x15   : > { %p839_p11 = pnand %p508_p9, %p810_p1 }
  0x17   : > { %p607_p13 = pneg %p839_p11 }
  0x19   : > { %p608_p0 = pnand %p607_p13, %p606_p12 }
  0x1b   : > { %p609_p3 = pneg %p608_p0 }
  0x1d   : > { %p614_p7 = pnand %p612_p5, %p609_p3 }
  0x1f   : > { %617 = shalt.err (!%p614_p7)
}
  0x20   : > { %s618_s5 = scalar_lea.vmem %s126_s23, 128  ;;  %p626_p4 = scmp.lt.s32.totalorder %s126_s23, %s126_s23 }
  0x21   : > { %p619_p9 = scmp.ne.s32.totalorder %s126_s23, %s618_s5  ;;  %p627_p1 = scmp.lt.s32.totalorder %s618_s5, %s618_s5 }
  0x23   : > { %p621_p10 = pnand %p619_p9, %p607_p13  ;;  %p628_p8 = por %p627_p1, %p626_p4 }
  0x25   : > { %p622_p6 = pneg %p621_p10 }
  0x27   : > { %p629_p2 = pnand %p628_p8, %p622_p6 }
  0x29   : > { %632 = shalt.err (!%p629_p2)
}
  0x2a   : > { %s752_s6 = smov 64   ;;  %s753_s7 = smov 4  }
  0x2b   : > { %511 = dma.hbm_to_vmem [thread:$0]  (!%p839_p11), %s1014_s0, 128, %s126_s23, [#allocation3], %s752_s6, %s752_s6, %s753_s7  }
  0x2c   : > { %p33_p1 = scmp.ge.s32.totalorder %s31_s25, 2  ;;  %s61_s16 = sadd.s32 1, %s737_s11 }
  0x2d   : > { %p68_p2 = scmp.ne.s32.totalorder %s737_s11, %s733_s10  ;;  %p69_p4 = scmp.eq.s32.totalorder %s749_s14, 0 }
  0x2e   : > { %s1042_s25 = smov (%p33_p1, %s31_s25), 0  ;;  %p1028_p8 = scmp.ne.s32.totalorder %s1022_s18, 0 }
  0x2f   : > { %p866_p6 = por %p69_p4, %p68_p2  ;;  %s56_s24 = ssub.s32 %s745_s13, %s1042_s25 }
  0x30   : > { %p872_p10 = por %p1028_p8, %p68_p2  ;;  %p521_p12 = scmp.lt.s32.totalorder %s749_s14, 2 }
  0x31   : > { %p59_p11 = scmp.eq.s32.totalorder %s56_s24, 0  ;;  %s139_s23 = sand.u32 1, %s737_s11  }
  0x32   : > { %s469_s27 = sshll.u32 %s139_s23, 7  ;;  %s498_s29 = sshll.u32 %s745_s13, 11 }
  0x33   : > { %s881_s28 = scalar_select %p59_p11, %s737_s11, %s61_s16  }
  0x34   : > { %s887_s4 = scalar_lea.hbm %s1015_s1, %s498_s29  ;;  %s143_s18 = scalar_lea.vmem [#allocation5], %s469_s27 }
  0x35   : > { %s152_s5 = sshll.u32 %s143_s18, 4  ;;  %p893_p13 = pnand %p521_p12, %p866_p6  ;;  %s889_s5 = int_to_ptr.vmem [resolvable:$true] %s152_s5 }
  0x36   : > { %s897_s7 = scalar_lea.sflag [#allocation6], %s139_s23  ;;  %s633_s8 = scalar_lea.hbm %s887_s4, 2048 }
  0x37   : > { %p634_p0 = scmp.ne.s32.totalorder %s887_s4, %s633_s8  ;;  %p635_p3 = pneg %p893_p13 }
  0x38   : > { %s638_s22 = scalar_lea.hbm %s1015_s1, 4096  ;;  %p639_p9 = scmp.lt.u32.totalorder %s887_s4, %s1015_s1 }
  0x39   : > { %p636_p5 = pnand %p635_p3, %p634_p0  ;;  %p640_p1 = scmp.lt.u32.totalorder %s638_s22, %s633_s8 }
  0x3a   : > { %p642_p4 = scmp.lt.u32.totalorder %s633_s8, %s887_s4 }
  0x3b   : > { %p637_p7 = pneg %p636_p5  ;;  %p641_p2 = por %p640_p1, %p639_p9 }
  0x3d   : > { %p643_p6 = por %p642_p4, %p641_p2 }
  0x3f   : > { %p644_p8 = pnand %p643_p6, %p637_p7 }
  0x41   : > { %647 = shalt.err (!%p644_p8)
}
  0x42   : > { %s648_s23 = scalar_lea.vmem %s889_s5, 2048  ;;  %s754_s29 = smov [#allocation5]  }
  0x43   : > { %p649_p12 = scmp.ne.s32.totalorder %s889_s5, %s648_s23  ;;  %s653_s30 = sshll.u32 %s754_s29, 4  ;;  %s654_s30 = int_to_ptr.vmem [resolvable:$false] %s653_s30 }
  0x44   : > { %s655_s3 = scalar_lea.vmem %s654_s30, 4096  ;;  %p656_p5 = scmp.lt.s32.totalorder %s889_s5, %s654_s30 }
  0x45   : > { %p651_p11 = pnand %p649_p12, %p635_p3  ;;  %p657_p9 = scmp.lt.s32.totalorder %s655_s3, %s648_s23 }
  0x47   : > { %p652_p0 = pneg %p651_p11  ;;  %p658_p1 = por %p657_p9, %p656_p5 }
  0x49   : > { %p659_p2 = pnand %p658_p1, %p652_p0 }
  0x4b   : > { %662 = shalt.err (!%p659_p2)
}
  0x4c   : > { %s755_s18 = smov 128   ;;  %s756_s8 = smov 8  }
  0x4d   : > { %515 = dma.hbm_to_vmem [thread:$0]  (!%p893_p13), %s887_s4, 2048, %s889_s5, %s897_s7, %s755_s18, %s755_s18, %s756_s8  }
  0x4e   : > { %p1031_p3 = scmp.ne.s32.totalorder %s1025_s21, 0 }
  0x4f   : > { %p1032_p7 = scmp.ne.s32.totalorder (!%p1031_p3), %s1021_s17, 0 }
  0x50   : > { %164 = sbr.rel (%p1031_p3) target bundleno = 355 (0x163), region = 28 }
  0x57   : > { %716 = dma.done.wait (%p1032_p7), [#allocation3], 128  }
  0x58   : > { %718 = vsyncadd (%p1032_p7), [#allocation3], 4294967168  ;;  %s932_s15 = sand.u32 1, %s733_s10   ;;  %p1033_p13 = scmp.ne.s32.totalorder %s1023_s19, 0 }
  0x59   : > { %s474_s16 = sshll.u32 %s932_s15, 7  ;;  %s171_s22 = scalar_lea.sflag [#allocation6], %s932_s15 }
  0x5a   : > { %s936_s24 = scalar_lea.vmem [#allocation5], %s474_s16 }
  0x5b   : > { %720 = dma.done.wait (%p1033_p13), %s171_s22, 2048  }
  0x5c   : > { %722 = vsyncadd (%p1033_p13), %s171_s22, 4294965248  ;;  %v757_v0 = vmov 0   ;;  %v580_v1 = vld [vmem:[%s936_s24 + $0x4] ss:$8 sps:$4 sm:$0xff]   ;;  %v582_v2 = vld [vmem:[%s936_s24] ss:$8 sps:$4 sm:$0xff]  }
  0x5d   : > { %334 = vmatprep.mubr.bf16.mxu0 %v757_v0  ;;  %302 = vmatprep.subr.bf16.mxu0 %v580_v1  ;;  %v583_v3 = vld [vmem:[%s936_s24 + $0x14] ss:$8 sps:$4 sm:$0xff]   ;;  %v585_v4 = vld [vmem:[%s936_s24 + $0x10] ss:$8 sps:$4 sm:$0xff]   ;;  %v586_v5 = vld [vmem:[%s936_s24 + $0x24] ss:$8 sps:$4 sm:$0xff]  }
  0x5e   : > { %303 = vmatpush1.bf16.msra.mxu0 %v582_v2  ;;  %v588_v6 = vld [vmem:[%s936_s24 + $0x20] ss:$8 sps:$4 sm:$0xff]   ;;  %v589_v7 = vld [vmem:[%s936_s24 + $0x34] ss:$8 sps:$4 sm:$0xff]   ;;  %v591_v8 = vld [vmem:[%s936_s24 + $0x30] ss:$8 sps:$4 sm:$0xff]  }
  0x5f   : > { %304 = vmatprep.subr.bf16.mxu0 %v583_v3  ;;  %v592_v9 = vld [vmem:[%s936_s24 + $0x44] ss:$8 sps:$4 sm:$0xff]   ;;  %v594_v10 = vld [vmem:[%s936_s24 + $0x40] ss:$8 sps:$4 sm:$0xff]   ;;  %v595_v11 = vld [vmem:[%s936_s24 + $0x54] ss:$8 sps:$4 sm:$0xff]  }
  0x60   : > { %v597_v12 = vld [vmem:[%s936_s24 + $0x50] ss:$8 sps:$4 sm:$0xff]   ;;  %v598_v13 = vld [vmem:[%s936_s24 + $0x64] ss:$8 sps:$4 sm:$0xff]   ;;  %v600_v14 = vld [vmem:[%s936_s24 + $0x60] ss:$8 sps:$4 sm:$0xff]  }
  0x61   : > { %v601_v15 = vld [vmem:[%s936_s24 + $0x74] ss:$8 sps:$4 sm:$0xff]   ;;  %v603_v16 = vld [vmem:[%s936_s24 + $0x70] ss:$8 sps:$4 sm:$0xff]   ;;  %s475_s17 = sshll.u32 %s932_s15, 5  ;;  %s499_s4 = sshll.u32 %s741_s12, 9 }
  0x62   : > { %305 = vmatpush1.bf16.msra.mxu0 %v585_v4  ;;  %v604_v17 = vld [vmem:[#allocation2] sm:$0xff]   ;;  %s194_s19 = scalar_lea.vmem [#allocation7], %s475_s17  ;;  %s965_s7 = scalar_lea.hbm %s1016_s2, %s499_s4 }
  0x63   : > { %306 = vmatprep.subr.bf16.mxu0 %v586_v5  ;;  %s365_s21 = sshll.u32 %s194_s19, 4  ;;  %s350_s27 = scalar_lea.sflag [#allocation4], %s932_s15  ;;  %s960_s21 = int_to_ptr.vmem [resolvable:$true] %s365_s21 }
  0x64   : > { %s663_s12 = scalar_lea.vmem %s960_s21, 512  ;;  %s758_s23 = smov [#allocation7]  }
  0x65   : > { %p664_p4 = scmp.ne.s32.totalorder %s960_s21, %s663_s12  ;;  %s667_s29 = sshll.u32 %s758_s23, 4  ;;  %s668_s29 = int_to_ptr.vmem [resolvable:$false] %s667_s29 }
  0x66   : > { %307 = vmatpush1.bf16.msra.mxu0 %v588_v6  ;;  %s669_s30 = scalar_lea.vmem %s668_s29, 1024  ;;  %p670_p12 = scmp.lt.s32.totalorder %s960_s21, %s668_s29 }
  0x67   : > { %308 = vmatprep.subr.bf16.mxu0 %v589_v7  ;;  %p665_p6 = pnand %p664_p4, %p872_p10  ;;  %p671_p11 = scmp.lt.s32.totalorder %s669_s30, %s663_s12 }
  0x69   : > { %p666_p8 = pneg %p665_p6  ;;  %p672_p0 = por %p671_p11, %p670_p12 }
  0x6a   : > { %309 = vmatpush1.bf16.msra.mxu0 %v591_v8 }
  0x6b   : > { %310 = vmatprep.subr.bf16.mxu0 %v592_v9  ;;  %p673_p5 = pnand %p672_p0, %p666_p8 }
  0x6e   : > { %311 = vmatpush1.bf16.msra.mxu0 %v594_v10 }
  0x6f   : > { %312 = vmatprep.subr.bf16.mxu0 %v595_v11 }
  0x72   : > { %313 = vmatpush1.bf16.msra.mxu0 %v597_v12 }
  0x73   : > { %314 = vmatprep.subr.bf16.mxu0 %v598_v13 }
  0x76   : > { %315 = vmatpush1.bf16.msra.mxu0 %v600_v14 }
  0x77   : > { %316 = vmatprep.subr.bf16.mxu0 %v601_v15 }
  0x7a   : > { %317 = vmatpush1.bf16.msra.mxu0 %v603_v16 }
  0x7d   : > { %335 = vmatmul.mubr.bf16.vlgmr.msra.gmra.mrb[0].mxu0 %v604_v17 }
 0x150   : > { %v336_v18 = vpop.f32.mrb[0].mxu0 }
 0x151   : > { %345 = vst [vmem:[%s194_s19] sm:$0xff] %v336_v18  ;;  %v338_v19 = vpop.f32.mrb[1].mxu0 }
 0x152   : > { %346 = vst [vmem:[%s194_s19 + $0x8] sm:$0xff] %v338_v19  ;;  %v340_v20 = vpop.f32.mrb[2].mxu0 }
 0x153   : > { %347 = vst [vmem:[%s194_s19 + $0x10] sm:$0xff] %v340_v20  ;;  %v342_v21 = vpop.f32.mrb[3].mxu0 }
 0x154   : > { %348 = vst [vmem:[%s194_s19 + $0x18] sm:$0xff] %v342_v21 }
 0x155   : > { %676 = shalt.err (!%p673_p5)
}
 0x156   : > { %s677_s3 = scalar_lea.hbm %s965_s7, 512  ;;  %s681_s16 = scalar_lea.hbm %s1016_s2, 1024 }
 0x157   : > { %p678_p9 = scmp.ne.s32.totalorder %s965_s7, %s677_s3  ;;  %p682_p3 = scmp.lt.u32.totalorder %s965_s7, %s1016_s2 }
 0x158   : > { %p683_p7 = scmp.lt.u32.totalorder %s681_s16, %s677_s3  ;;  %p685_p4 = scmp.lt.u32.totalorder %s677_s3, %s965_s7 }
 0x159   : > { %p679_p1 = pnand %p678_p9, %p872_p10 }
 0x15a   : > { %p684_p13 = por %p683_p7, %p682_p3 }
 0x15b   : > { %p680_p2 = pneg %p679_p1 }
 0x15c   : > { %p686_p6 = por %p685_p4, %p684_p13 }
 0x15e   : > { %p687_p8 = pnand %p686_p6, %p680_p2 }
 0x160   : > { %690 = shalt.err (!%p687_p8)
}
 0x161   : > { %s759_s17 = smov 256   ;;  %s760_s19 = smov 16  }
 0x162   : > { %506 = dma.vmem_to_hbm [thread:$0]  (%p872_p10), %s960_s21, 512, %s965_s7, %s350_s27, %s759_s17, %s759_s17, %s760_s19  }
 0x163 PF: > { %s380_s4 = sand.u32 1, %s729_s9   ;;  %p1034_p12 = scmp.ne.s32.totalorder %s1024_s20, 0 }
 0x164   : > { %p1035_p11 = scmp.ge.s32.totalorder %s749_s14, 2  ;;  %s381_s5 = scalar_lea.sflag [#allocation4], %s380_s4 }
 0x166   : > { %p517_p0 = pnand %p1035_p11, %p1034_p12 }
 0x168   : > { %724 = dma.done.wait (!%p517_p0), %s381_s5, 512  }
 0x169   : > { %726 = vsyncadd (!%p517_p0), %s381_s5, 4294966784  ;;  %s19_s14 = sadd.s32 1, %s749_s14   ;;  %s1036_s9 = smov %s733_s10 }
 0x16a   : > { %p16_p5 = scmp.ge.s32.totalorder %s19_s14, 4   ;;  %s1037_s10 = smov %s737_s11 }
 0x16b   : > { %s1038_s11 = smov %s881_s28  ;;  %s1039_s12 = smov %s745_s13 }
 0x16c   : > { %s1040_s13 = smov %s1042_s25  ;;  %18 = sbr.rel (!%p16_p5) target bundleno = 7 (0x7), region = 78 }
 0x173   :  { %386 = vsyncpa [#allocation3], 1 }
 0x174   :  { %388 = vsyncpa [#allocation3 + $0x1], 1 }
 0x175   :  { %389 = vsyncpa [#allocation6], 1 }
 0x176   :  { %391 = vsyncpa [#allocation6 + $0x1], 1 }
 0x177   :  { %392 = vsyncpa [#allocation4], 1 }
 0x178   :  { %394 = vsyncpa [#allocation4 + $0x1], 1 }

</bundles_post_ra>
